<compile_context>
chip_gen: v5e
topology: v5e:2x2
jax: 0.10.0
libtpu: 0.0.40
codegen_flags: <defaults>
</compile_context>

<pallas_src>
import math

import jax
import jax.numpy as jnp
from jax.experimental import pallas as pl
from jax.experimental.pallas import tpu as pltpu


def _round_up(x, n):
    return ((x + n - 1) // n) * n


def _round_down(x, n):
    return (x // n) * n


def _linear_kernel(x_ref, w_ref, b_ref, o_ref):
    # x_ref: (tm, in_dim), w_ref: (tn, in_dim), b_ref: (1, tn), o_ref: (tm, tn)
    # Contract x dim 1 with w dim 1 (i.e. x @ w.T) on the MXU, f32 accumulation.
    acc = jax.lax.dot_general(
        x_ref[...],
        w_ref[...],
        dimension_numbers=(((1,), (1,)), ((), ())),
        preferred_element_type=jnp.float32,
    )
    o_ref[...] = (acc + b_ref[...]).astype(o_ref.dtype)


def projection_embedding_linear(
    x,
    weight,
    bias,
    *,
    tm=4096,
    use_bf16=False,
    vmem_budget_bytes=48 * 1024 * 1024,
):
    """Pallas implementation of nn.Linear forward: y = x @ weight.T + bias.

    x:      (..., in_dim)
    weight: (out_dim, in_dim)   (PyTorch layout; no transpose materialized)
    bias:   (out_dim,)
    returns (..., out_dim) in x's dtype.
    """
    *lead, in_dim = x.shape
    out_dim = weight.shape[0]
    m = int(math.prod(lead)) if lead else 1

    out_dtype = x.dtype
    compute_dtype = jnp.bfloat16 if use_bf16 else x.dtype
    itemsize = jnp.dtype(compute_dtype).itemsize
    out_itemsize = jnp.dtype(out_dtype).itemsize

    x2d = x.reshape(m, in_dim).astype(compute_dtype)
    w = weight.astype(compute_dtype)
    b = bias.reshape(1, out_dim).astype(jnp.float32)  # bias add in f32 epilogue

    # Sublane multiple: 8 for 32-bit, 16 for bf16 (packed sublanes).
    sub = 8 * (4 // itemsize)

    # ---- N (out_dim) tiling: keep whole weight resident in VMEM if it fits ----
    w_bytes = out_dim * in_dim * itemsize
    if w_bytes <= vmem_budget_bytes // 4:
        tn = out_dim                           # whole weight resident (1 buffer)
        w_vmem = w_bytes
    else:
        # Stream 256-wide out_dim tiles (full v6e/v7x MXU width), double-buffered.
        tn_cap = (vmem_budget_bytes // 4) // (2 * in_dim * itemsize)
        tn = max(256, _round_down(tn_cap, 256))
        tn = min(tn, _round_up(out_dim, 256))
        w_vmem = 2 * tn * in_dim * itemsize
    n_n = pl.cdiv(out_dim, tn)

    # ---- M tiling: largest tile that fits the VMEM budget, >= 2 tiles for v7x ----
    bias_vmem = out_dim * 4
    row_bytes = 2 * (in_dim * itemsize + tn * out_itemsize)  # dbl-buffered x + out
    avail = max(vmem_budget_bytes - w_vmem - bias_vmem, row_bytes * sub)
    tm_cap = max(sub, _round_down(avail // row_bytes, sub))
    tm = max(sub, _round_down(min(tm, tm_cap, _round_up(m, sub)), sub))
    if m >= 1024:
        # Keep at least 2 M tiles so v7x can shard the grid across both TCs.
        tm = max(sub, min(tm, _round_up(pl.cdiv(m, 2), sub)))
    n_m = pl.cdiv(m, tm)

    # ---- Explicit VMEM limit sized to the footprint (+25% headroom) ----
    footprint = (
        w_vmem
        + bias_vmem
        + 2 * tm * in_dim * itemsize
        + 2 * tm * tn * out_itemsize
    )
    vmem_limit = int(min(max(footprint + footprint // 4 + (1 << 20), 32 << 20),
                         56 << 20))

    cost = pl.CostEstimate(
        flops=2 * m * in_dim * out_dim,
        transcendentals=0,
        bytes_accessed=(
            m * in_dim * itemsize
            + w_bytes
            + out_dim * 4
            + m * out_dim * out_itemsize
        ),
    )

    out = pl.pallas_call(
        _linear_kernel,
        out_shape=jax.ShapeDtypeStruct((m, out_dim), out_dtype),
        grid_spec=pltpu.PrefetchScalarGridSpec(
            num_scalar_prefetch=0,
            grid=(n_m, n_n),
            in_specs=[
                # x: streamed / double-buffered per M tile (constant across j).
                pl.BlockSpec((tm, in_dim), lambda i, j: (i, 0)),
                # weight: resident (n_n == 1) or streamed per N tile.
                pl.BlockSpec((tn, in_dim), lambda i, j: (j, 0)),
                # bias: resident or streamed per N tile.
                pl.BlockSpec((1, tn), lambda i, j: (0, j)),
            ],
            out_specs=pl.BlockSpec((tm, tn), lambda i, j: (i, j)),
        ),
        compiler_params=pltpu.CompilerParams(
            dimension_semantics=("parallel", "parallel"),
            vmem_limit_bytes=vmem_limit,
        ),
        cost_estimate=cost,
    )(x2d, w, b)

    return out.reshape(*lead, out_dim)


if __name__ == "__main__":
    # ProjectionEmbedding('linear', in_dim=32, out_dim=64)
    batch, seq, in_dim, out_dim = 2, 8, 32, 64

    key = jax.random.PRNGKey(0)
    kx, kw, kb = jax.random.split(key, 3)

    x = jax.random.normal(kx, (batch, seq, in_dim), dtype=jnp.float32)

    # Deterministic PyTorch-style Linear init: U(-1/sqrt(in_dim), 1/sqrt(in_dim))
    bound = 1.0 / math.sqrt(in_dim)
    weight = jax.random.uniform(
        kw, (out_dim, in_dim), minval=-bound, maxval=bound, dtype=jnp.float32
    )
    bias = jax.random.uniform(
        kb, (out_dim,), minval=-bound, maxval=bound, dtype=jnp.float32
    )

    # Small-shape check (single grid point).
    y = jax.block_until_ready(projection_embedding_linear(x, weight, bias))
    y_ref = x @ weight.T + bias
    assert y.shape == (batch, seq, out_dim)
    assert jnp.allclose(y, y_ref, atol=1e-5, rtol=1e-5)

    # Shape that exercises M tiling, the >=2-tile megacore cap, and the
    # ragged (write-masked) last M block, with no wrapper-side padding.
    xb = jax.random.normal(kx, (3, 700, in_dim), dtype=jnp.float32)
    yb = jax.block_until_ready(projection_embedding_linear(xb, weight, bias))
    yb_ref = xb @ weight.T + bias
    assert yb.shape == (3, 700, out_dim)
    assert jnp.allclose(yb, yb_ref, atol=1e-5, rtol=1e-5)

    # Optional bf16 compute path (f32 MXU accumulation) — looser tolerance.
    yc = jax.block_until_ready(
        projection_embedding_linear(xb, weight, bias, use_bf16=True)
    )
    assert yc.shape == (3, 700, out_dim)
    assert jnp.allclose(yc, yb_ref, atol=1e-1, rtol=1e-1)

    print("KERNEL_OK")
</pallas_src>

<mosaic_0001>
module attributes {stable_mosaic.version = 11 : i64} {
  func.func @_linear_kernel(%arg0: i32, %arg1: i32, %arg2: memref<16x32xf32, #tpu.memory_space<vmem>>, %arg3: memref<64x32xf32, #tpu.memory_space<vmem>>, %arg4: memref<1x64xf32, #tpu.memory_space<vmem>>, %arg5: memref<16x64xf32, #tpu.memory_space<vmem>>) attributes {dimension_semantics = [#tpu.dimension_semantics<parallel>, #tpu.dimension_semantics<parallel>], iteration_bounds = array<i64: 1, 1>, scalar_prefetch = 0 : i64, scratch_operands = 0 : i64, tpu.core_type = #tpu.core_type<tc>, window_params = [{transform_indices = @transform_0, window_bounds = array<i64: 16, 32>}, {transform_indices = @transform_1, window_bounds = array<i64: 64, 32>}, {transform_indices = @transform_2, window_bounds = array<i64: 1, 64>}, {transform_indices = @transform_3, window_bounds = array<i64: 16, 64>}]} {
    %c0 = arith.constant 0 : index
    %c0_0 = arith.constant 0 : index
    %0 = vector.load %arg2[%c0, %c0_0] : memref<16x32xf32, #tpu.memory_space<vmem>>, vector<16x32xf32>
    %c0_1 = arith.constant 0 : index
    %c0_2 = arith.constant 0 : index
    %1 = vector.load %arg3[%c0_1, %c0_2] : memref<64x32xf32, #tpu.memory_space<vmem>>, vector<64x32xf32>
    %cst = arith.constant dense<0.000000e+00> : vector<16x64xf32>
    %2 = tpu.matmul %0, %1, %cst {dimension_numbers = #tpu.dot_dimension_numbers<[1], [1], [0], [0], [0, 0, 1, 0], [], []>} : vector<16x32xf32>, vector<64x32xf32>, vector<16x64xf32> -> vector<16x64xf32>
    %c0_3 = arith.constant 0 : index
    %c0_4 = arith.constant 0 : index
    %3 = vector.load %arg4[%c0_3, %c0_4] : memref<1x64xf32, #tpu.memory_space<vmem>>, vector<1x64xf32>
    %4 = vector.broadcast %3 : vector<1x64xf32> to vector<16x64xf32>
    %5 = arith.addf %2, %4 : vector<16x64xf32>
    %c0_5 = arith.constant 0 : index
    %c0_6 = arith.constant 0 : index
    %6 = vector.load %arg5[%c0_5, %c0_6] : memref<16x64xf32, #tpu.memory_space<vmem>>, vector<16x64xf32>
    tpu.vector_store %arg5[%c0_5, %c0_6], %5 {strides = array<i32>} : memref<16x64xf32, #tpu.memory_space<vmem>>, vector<16x64xf32>,
    return
  }
  func.func @transform_0(%arg0: i32, %arg1: i32) -> (i32, i32) {
    %c0_i32 = arith.constant 0 : i32
    %c0_i32_0 = arith.constant 0 : i32
    return %arg0, %c0_i32 : i32, i32
  }
  func.func @transform_1(%arg0: i32, %arg1: i32) -> (i32, i32) {
    %c0_i32 = arith.constant 0 : i32
    %c0_i32_0 = arith.constant 0 : i32
    return %arg1, %c0_i32 : i32, i32
  }
  func.func @transform_2(%arg0: i32, %arg1: i32) -> (i32, i32) {
    %c0_i32 = arith.constant 0 : i32
    %c0_i32_0 = arith.constant 0 : i32
    return %c0_i32, %arg1 : i32, i32
  }
  func.func @transform_3(%arg0: i32, %arg1: i32) -> (i32, i32) {
    %c0_i32 = arith.constant 0 : i32
    return %arg0, %arg1 : i32, i32
  }
}

</mosaic_0001>

<bundles_post_ra>
// kernel: tpu_custom_call.1
= control target key start
LH: loop header
LB: loop body
LE: loop exit
PB: predicated region body
PF: predicated region fallthrough
CT: control target
= control target key end

     0   :  { %vm29_vm0 = vcmask 261120   ;;  %s229_s0 = inlined_call_operand.vmem [shape: f32[16,32], index: 0, kind: input, shape index: {}]   ;;  %s230_s1 = inlined_call_operand.vmem [shape: f32[64,32], index: 1, kind: input, shape index: {}]   ;;  %s231_s2 = inlined_call_operand.vmem [shape: f32[1,64], index: 2, kind: input, shape index: {}]   ;;  %s232_s3 = inlined_call_operand.hbm [shape: f32[16,64], index: 3, kind: output, shape index: {}]  }
   0x1   :  { %v24_v0 = vld [vmem:[%s230_s1 + $0x38] sm:$0xff]  ;;  %v23_v1 = vld [vmem:[%s230_s1 + $0x30] sm:$0xff] }
   0x2   :  { %104 = vmatpush.xpose.msk.msra.mxu0 %vm29_vm0, %v24_v0  ;;  %114 = vmatpush.xpose.msk.msra.mxu1 %vm29_vm0, %v24_v0 }
   0x3   :  { %8 = vsyncpa [#allocation3], 0  ;;  %v22_v2 = vld [vmem:[%s230_s1 + $0x28] sm:$0xff]  ;;  %v21_v3 = vld [vmem:[%s230_s1 + $0x20] sm:$0xff]  ;;  %s92_s10 = sshll.u32 %s232_s3, 4  ;;  %vm83_vm1 = vcmask 523264   ;;  %s93_s10 = int_to_ptr.hbm [resolvable:$true] %s92_s10 }
   0x4   :  { %v20_v4 = vld [vmem:[%s230_s1 + $0x18] sm:$0xff]  ;;  %v19_v5 = vld [vmem:[%s230_s1 + $0x10] sm:$0xff]  ;;  %v18_v6 = vld [vmem:[%s230_s1 + $0x8] sm:$0xff]  ;;  %s154_s11 = smov 8  }
   0x5   :  { %v17_v7 = vld [vmem:[%s230_s1] sm:$0xff]  ;;  %v16_v9 = vld [vmem:[%s229_s0 + $0x8] sm:$0xff]  ;;  %s152_s1 = smov [#allocation2]  }
   0x6   :  { %105 = vmatpush.xpose.msk.msra.mxu0 %vm29_vm0, %v23_v1  ;;  %115 = vmatpush.xpose.msk.msra.mxu1 %vm29_vm0, %v23_v1  ;;  %v15_v8 = vld [vmem:[%s229_s0] sm:$0xff]  ;;  %s90_s7 = sshll.u32 %s152_s1, 4  ;;  %s153_s0 = smov 128   ;;  %s91_s7 = int_to_ptr.vmem [resolvable:$true] %s90_s7 }
   0x7   :  { %v125_v10 = vld [vmem:[%s231_s2] ss:$0 sm:$0xff] }
   0xa   :  { %106 = vmatpush.xpose.msk.msra.mxu0 %vm29_vm0, %v22_v2  ;;  %116 = vmatpush.xpose.msk.msra.mxu1 %vm29_vm0, %v22_v2 }
   0xe   :  { %107 = vmatpush.xpose.msk.msra.mxu0 %vm29_vm0, %v21_v3  ;;  %117 = vmatpush.xpose.msk.msra.mxu1 %vm29_vm0, %v21_v3 }
  0x12   :  { %108 = vmatpush.xpose.msk.msra.mxu0 %vm29_vm0, %v20_v4  ;;  %118 = vmatpush.xpose.msk.msra.mxu1 %vm29_vm0, %v20_v4 }
  0x16   :  { %109 = vmatpush.xpose.msk.msra.mxu0 %vm29_vm0, %v19_v5  ;;  %119 = vmatpush.xpose.msk.msra.mxu1 %vm29_vm0, %v19_v5 }
  0x1a   :  { %110 = vmatpush.xpose.msk.msra.mxu0 %vm29_vm0, %v18_v6  ;;  %120 = vmatpush.xpose.msk.msra.mxu1 %vm29_vm0, %v18_v6 }
  0x1e   :  { %111 = vmatpush.xpose.msk.msra.mxu0 %vm29_vm0, %v17_v7  ;;  %121 = vmatpush.xpose.msk.msra.mxu1 %vm29_vm0, %v17_v7 }
  0x21   :  { %112 = vmatmul.msk.f32.vlgmr.msra.gmra.mxu0 %vm29_vm0, %v15_v8  ;;  %113 = vmatmul.msk.f32.vlgmr.msra.gmra.mxu1 %vm29_vm0, %v16_v9 }
  0x9e   :  { %v77_v11 = vpop.f32.mrf.mxu0  ;;  %v80_v12 = vpop.f32.mrf.mxu1 }
  0x9f   :  { %v78_v13 = vadd.f32 %v125_v10, %v77_v11  ;;  %v81_v14 = vadd.f32 %v125_v10, %v80_v12 }
  0xa1   :  { %84 = vst.msk [vmem:[#allocation2] sm:$0xff] %vm83_vm1, %v78_v13 }
  0xa2   :  { %85 = vst.msk [vmem:[#allocation2 + $0x8] sm:$0xff] %vm83_vm1, %v81_v14 }
  0xa3   :  { %98 = dma.vmem_to_hbm [thread:$0]  %s91_s7, 256, %s93_s10, [#allocation3], %s153_s0, %s153_s0, %s154_s11  }
  0xa4   :  { %150 = dma.done.wait [#allocation3], 256  }
  0xa5   :  { %151 = vsyncadd [#allocation3], 4294967040 }
  0xa6   :  { %103 = vsyncpa [#allocation3], 1 }

</bundles_post_ra>
